<compile_context>
chip_gen: v7x
topology: tpu7x:2x2x1
jax: 0.10.0
libtpu: 0.0.40
codegen_flags: <defaults>
</compile_context>

<pallas_src>
import jax
import jax.numpy as jnp
from jax.experimental import pallas as pl
from jax.experimental.pallas import tpu as pltpu


# ----------------------------------------------------------------------------
# Fused forward kernel (built per static layer-count configuration)
# ----------------------------------------------------------------------------
def _make_fused_kernel(n_t: int, n_s: int, n_st: int, t_out_dim: int):
    """Fused AnoModel forward.

    Input ref order:  t_ref, s_ref,
                      (w, b) * n_t      # t_net   (Linear + ReLU)
                      (w, b) * n_s      # s_net   (Linear + ReLU)
                      (w, b) * n_st     # st_net  (Linear + ReLU)
                      (w, b)            # affine  (Linear, no act)
    Output ref order: out_ref (st_output), feat_ref (st_feature)
    All weights are laid out (d_in, d_out); biases are (1, d_out).
    """
    n_param_refs = 2 * (n_t + n_s + n_st + 1)

    def kernel(t_ref, s_ref, *rest):
        p = rest[:n_param_refs]
        out_ref = rest[n_param_refs]
        feat_ref = rest[n_param_refs + 1]

        def dense(x, w_ref, b_ref, relu):
            y = jnp.dot(x, w_ref[...], preferred_element_type=jnp.float32)
            y = y + b_ref[...]
            return jnp.maximum(y, 0.0) if relu else y

        k = 0
        # --- t_net branch (all activations stay in vregs/VMEM) ---
        t = t_ref[...]
        for _ in range(n_t):
            t = dense(t, p[k], p[k + 1], True)
            k += 2
        # --- s_net branch ---
        s = s_ref[...]
        for _ in range(n_s):
            s = dense(s, p[k], p[k + 1], True)
            k += 2

        # st_feature = concat([t, s], axis=1): write the two branch results
        # into adjacent column ranges of the output tile (no extra concat op,
        # no cross-lane shuffle of a temporary).
        feat_ref[:, :t_out_dim] = t.astype(feat_ref.dtype)
        feat_ref[:, t_out_dim:] = s.astype(feat_ref.dtype)

        # st_net hidden layers (ReLU) followed by the affine output layer.
        # The FIRST layer consumes the concatenation; split its weight rows
        # into the part multiplying `t` and the part multiplying `s` so the
        # concatenated activation never needs to be built.
        relu_flags = [True] * n_st + [False]  # affine has no activation
        st = None
        for li, relu in enumerate(relu_flags):
            w_ref, b_ref = p[k], p[k + 1]
            k += 2
            if li == 0:
                y = jnp.dot(t, w_ref[:t_out_dim, :],
                            preferred_element_type=jnp.float32)
                y = y + jnp.dot(s, w_ref[t_out_dim:, :],
                                preferred_element_type=jnp.float32)
                y = y + b_ref[...]
                st = jnp.maximum(y, 0.0) if relu else y
            else:
                st = dense(st, w_ref, b_ref, relu)

        out_ref[...] = st.astype(out_ref.dtype)

    return kernel


# ----------------------------------------------------------------------------
# Wrapper: single pallas_call for the whole forward pass
# ----------------------------------------------------------------------------
def ano_model_forward(params, tfeature, sfeature, *, batch_tile=None):
    batch, tf_dim = tfeature.shape
    _, sf_dim = sfeature.shape

    t_layers = params["t_net"]      # list of (w (d_in, d_out), b (1, d_out))
    s_layers = params["s_net"]
    st_layers = params["st_net"]
    affine = params["affine"]

    n_t, n_s, n_st = len(t_layers), len(s_layers), len(st_layers)
    t_out_dim = t_layers[-1][0].shape[1] if n_t else tf_dim
    s_out_dim = s_layers[-1][0].shape[1] if n_s else sf_dim
    feat_dim = t_out_dim + s_out_dim
    out_dim = affine[0].shape[1]

    flat = []
    for w, b in t_layers + s_layers + st_layers + [affine]:
        flat.append(w)
        flat.append(b)

    # Batch grid: shards large batches across grid steps (megacore-parallel
    # on chips with >1 TensorCore).  Weights use a constant index_map so the
    # same VMEM block stays resident across grid iterations.
    if batch_tile is None:
        batch_tile = batch if batch <= 128 else 128
    assert batch % batch_tile == 0, "batch must be divisible by batch_tile"
    grid = (batch // batch_tile,)

    batch_map = lambda i: (i, 0)
    const_map = lambda i: (0, 0)

    in_specs = [
        pl.BlockSpec((batch_tile, tf_dim), batch_map),
        pl.BlockSpec((batch_tile, sf_dim), batch_map),
    ]
    for arr in flat:
        in_specs.append(pl.BlockSpec(arr.shape, const_map))

    out_specs = (
        pl.BlockSpec((batch_tile, out_dim), batch_map),
        pl.BlockSpec((batch_tile, feat_dim), batch_map),
    )
    out_shape = (
        jax.ShapeDtypeStruct((batch, out_dim), jnp.float32),
        jax.ShapeDtypeStruct((batch, feat_dim), jnp.float32),
    )

    kernel = _make_fused_kernel(n_t, n_s, n_st, t_out_dim)

    st_output, st_feature = pl.pallas_call(
        kernel,
        grid=grid,
        in_specs=in_specs,
        out_specs=out_specs,
        out_shape=out_shape,
        compiler_params=pltpu.CompilerParams(
            dimension_semantics=("parallel",)),
    )(tfeature, sfeature, *flat)
    return st_output, st_feature


# ----------------------------------------------------------------------------
# Parameter construction (deterministic; mirrors AnoModel.__init__ shapes).
# Weights are stored (d_in, d_out) so the kernel never transposes.
# ----------------------------------------------------------------------------
def _linear_params(key, d_in, d_out):
    """nn.Linear-style init (uniform +/- 1/sqrt(d_in)), stored (d_in, d_out)."""
    kw, kb = jax.random.split(key)
    bound = float(d_in) ** -0.5
    w = jax.random.uniform(kw, (d_in, d_out), jnp.float32, -bound, bound)
    b = jax.random.uniform(kb, (1, d_out), jnp.float32, -bound, bound)
    return w, b


def _truncnorm_params(key, d_in, d_out):
    """Affine init: truncnorm(-0.2, 0.2, loc=0, scale=0.1), stored (d_in, d_out)."""
    kw, kb = jax.random.split(key)
    w = 0.1 * jax.random.truncated_normal(kw, -0.2, 0.2, (d_in, d_out), jnp.float32)
    b = 0.1 * jax.random.truncated_normal(kb, -0.2, 0.2, (1, d_out), jnp.float32)
    return w, b


def make_ano_model_params(key, tf_units, sf_units, st_units, out_dim, sf_dim, tf_dim):
    """Build parameters with the same layer-size logic as AnoModel.__init__."""
    del st_units  # NOTE: the original module builds st_net from tf_units (faithful)
    params = {"t_net": [], "s_net": [], "st_net": []}

    size_list = [tf_dim] + list(tf_units)
    for i in range(len(size_list) - 1):
        key, sub = jax.random.split(key)
        params["t_net"].append(_linear_params(sub, size_list[i], size_list[i + 1]))

    size_list = [sf_dim] + list(sf_units)
    for i in range(len(size_list) - 1):
        key, sub = jax.random.split(key)
        params["s_net"].append(_linear_params(sub, size_list[i], size_list[i + 1]))

    t_out = tf_units[-1] if len(tf_units) > 0 else tf_dim
    s_out = sf_units[-1] if len(sf_units) > 0 else sf_dim
    size_list = [t_out + s_out] + list(tf_units)
    for i in range(len(size_list) - 1):
        key, sub = jax.random.split(key)
        params["st_net"].append(_linear_params(sub, size_list[i], size_list[i + 1]))
    key, sub = jax.random.split(key)
    params["affine"] = _truncnorm_params(sub, size_list[-1], out_dim)
    return params


# ----------------------------------------------------------------------------
# Demo
# ----------------------------------------------------------------------------
if __name__ == "__main__":
    batch = 8
    tf_dim = 16
    sf_dim = 16
    tf_units = [32, 32]
    sf_units = [32]
    st_units = [32, 32]  # present in __init__ signature but unused by the module
    out_dim = 4

    key = jax.random.PRNGKey(0)
    kp, kt, ks = jax.random.split(key, 3)

    params = make_ano_model_params(
        kp, tf_units, sf_units, st_units, out_dim, sf_dim, tf_dim
    )

    tfeature = jax.random.normal(kt, (batch, tf_dim), jnp.float32)
    sfeature = jax.random.normal(ks, (batch, sf_dim), jnp.float32)

    st_output, st_feature = ano_model_forward(params, tfeature, sfeature)
    jax.block_until_ready((st_output, st_feature))

    assert st_output.shape == (batch, out_dim)
    assert st_feature.shape == (batch, tf_units[-1] + sf_units[-1])

    # Pure-JAX reference (weights are (d_in, d_out) so y = x @ w + b).
    def _ref_dense(x, w, b, relu):
        y = x @ w + b
        return jnp.maximum(y, 0.0) if relu else y

    t_ref = tfeature
    for w, b in params["t_net"]:
        t_ref = _ref_dense(t_ref, w, b, True)
    s_ref = sfeature
    for w, b in params["s_net"]:
        s_ref = _ref_dense(s_ref, w, b, True)
    stf_ref = jnp.concatenate([t_ref, s_ref], axis=1)
    sto_ref = stf_ref
    for w, b in params["st_net"]:
        sto_ref = _ref_dense(sto_ref, w, b, True)
    w, b = params["affine"]
    sto_ref = _ref_dense(sto_ref, w, b, False)

    assert jnp.allclose(st_feature, stf_ref, atol=1e-5, rtol=1e-5)
    assert jnp.allclose(st_output, sto_ref, atol=1e-5, rtol=1e-5)

    print("KERNEL_OK")
</pallas_src>

<mosaic_0001>
module attributes {stable_mosaic.version = 11 : i64} {
  func.func @kernel(%arg0: i32, %arg1: memref<8x16xf32, #tpu.memory_space<vmem>>, %arg2: memref<8x16xf32, #tpu.memory_space<vmem>>, %arg3: memref<16x32xf32, #tpu.memory_space<vmem>>, %arg4: memref<1x32xf32, #tpu.memory_space<vmem>>, %arg5: memref<32x32xf32, #tpu.memory_space<vmem>>, %arg6: memref<1x32xf32, #tpu.memory_space<vmem>>, %arg7: memref<16x32xf32, #tpu.memory_space<vmem>>, %arg8: memref<1x32xf32, #tpu.memory_space<vmem>>, %arg9: memref<64x32xf32, #tpu.memory_space<vmem>>, %arg10: memref<1x32xf32, #tpu.memory_space<vmem>>, %arg11: memref<32x32xf32, #tpu.memory_space<vmem>>, %arg12: memref<1x32xf32, #tpu.memory_space<vmem>>, %arg13: memref<32x4xf32, #tpu.memory_space<vmem>>, %arg14: memref<1x4xf32, #tpu.memory_space<vmem>>, %arg15: memref<8x4xf32, #tpu.memory_space<vmem>>, %arg16: memref<8x64xf32, #tpu.memory_space<vmem>>) attributes {dimension_semantics = [#tpu.dimension_semantics<parallel>], iteration_bounds = array<i64: 1>, scalar_prefetch = 0 : i64, scratch_operands = 0 : i64, tpu.core_type = #tpu.core_type<tc>, window_params = [{transform_indices = @transform_0, window_bounds = array<i64: 8, 16>}, {transform_indices = @transform_1, window_bounds = array<i64: 8, 16>}, {pipeline_mode = #tpu.pipeline_mode<synchronous>, transform_indices = @transform_2, window_bounds = array<i64: 16, 32>}, {pipeline_mode = #tpu.pipeline_mode<synchronous>, transform_indices = @transform_3, window_bounds = array<i64: 1, 32>}, {pipeline_mode = #tpu.pipeline_mode<synchronous>, transform_indices = @transform_4, window_bounds = array<i64: 32, 32>}, {pipeline_mode = #tpu.pipeline_mode<synchronous>, transform_indices = @transform_5, window_bounds = array<i64: 1, 32>}, {pipeline_mode = #tpu.pipeline_mode<synchronous>, transform_indices = @transform_6, window_bounds = array<i64: 16, 32>}, {pipeline_mode = #tpu.pipeline_mode<synchronous>, transform_indices = @transform_7, window_bounds = array<i64: 1, 32>}, {pipeline_mode = #tpu.pipeline_mode<synchronous>, transform_indices = @transform_8, window_bounds = array<i64: 64, 32>}, {pipeline_mode = #tpu.pipeline_mode<synchronous>, transform_indices = @transform_9, window_bounds = array<i64: 1, 32>}, {pipeline_mode = #tpu.pipeline_mode<synchronous>, transform_indices = @transform_10, window_bounds = array<i64: 32, 32>}, {pipeline_mode = #tpu.pipeline_mode<synchronous>, transform_indices = @transform_11, window_bounds = array<i64: 1, 32>}, {pipeline_mode = #tpu.pipeline_mode<synchronous>, transform_indices = @transform_12, window_bounds = array<i64: 32, 4>}, {pipeline_mode = #tpu.pipeline_mode<synchronous>, transform_indices = @transform_13, window_bounds = array<i64: 1, 4>}, {transform_indices = @transform_14, window_bounds = array<i64: 8, 4>}, {transform_indices = @transform_15, window_bounds = array<i64: 8, 64>}]} {
    %c0 = arith.constant 0 : index
    %c0_0 = arith.constant 0 : index
    %0 = vector.load %arg1[%c0, %c0_0] : memref<8x16xf32, #tpu.memory_space<vmem>>, vector<8x16xf32>
    %c0_1 = arith.constant 0 : index
    %c0_2 = arith.constant 0 : index
    %1 = vector.load %arg3[%c0_1, %c0_2] : memref<16x32xf32, #tpu.memory_space<vmem>>, vector<16x32xf32>
    %cst = arith.constant dense<0.000000e+00> : vector<8x32xf32>
    %2 = tpu.matmul %0, %1, %cst {dimension_numbers = #tpu.dot_dimension_numbers<[1], [0], [0], [1], [0, 0, 1, 1], [], []>} : vector<8x16xf32>, vector<16x32xf32>, vector<8x32xf32> -> vector<8x32xf32>
    %c0_3 = arith.constant 0 : index
    %c0_4 = arith.constant 0 : index
    %3 = vector.load %arg4[%c0_3, %c0_4] : memref<1x32xf32, #tpu.memory_space<vmem>>, vector<1x32xf32>
    %4 = vector.broadcast %3 : vector<1x32xf32> to vector<8x32xf32>
    %5 = arith.addf %2, %4 : vector<8x32xf32>
    %cst_5 = arith.constant 0.000000e+00 : f32
    %6 = vector.broadcast %cst_5 : f32 to vector<8x32xf32>
    %7 = arith.maximumf %5, %6 : vector<8x32xf32>
    %c0_6 = arith.constant 0 : index
    %c0_7 = arith.constant 0 : index
    %8 = vector.load %arg5[%c0_6, %c0_7] : memref<32x32xf32, #tpu.memory_space<vmem>>, vector<32x32xf32>
    %cst_8 = arith.constant dense<0.000000e+00> : vector<8x32xf32>
    %9 = tpu.matmul %7, %8, %cst_8 {dimension_numbers = #tpu.dot_dimension_numbers<[1], [0], [0], [1], [0, 0, 1, 1], [], []>} : vector<8x32xf32>, vector<32x32xf32>, vector<8x32xf32> -> vector<8x32xf32>
    %c0_9 = arith.constant 0 : index
    %c0_10 = arith.constant 0 : index
    %10 = vector.load %arg6[%c0_9, %c0_10] : memref<1x32xf32, #tpu.memory_space<vmem>>, vector<1x32xf32>
    %11 = vector.broadcast %10 : vector<1x32xf32> to vector<8x32xf32>
    %12 = arith.addf %9, %11 : vector<8x32xf32>
    %cst_11 = arith.constant 0.000000e+00 : f32
    %13 = vector.broadcast %cst_11 : f32 to vector<8x32xf32>
    %14 = arith.maximumf %12, %13 : vector<8x32xf32>
    %c0_12 = arith.constant 0 : index
    %c0_13 = arith.constant 0 : index
    %15 = vector.load %arg2[%c0_12, %c0_13] : memref<8x16xf32, #tpu.memory_space<vmem>>, vector<8x16xf32>
    %c0_14 = arith.constant 0 : index
    %c0_15 = arith.constant 0 : index
    %16 = vector.load %arg7[%c0_14, %c0_15] : memref<16x32xf32, #tpu.memory_space<vmem>>, vector<16x32xf32>
    %cst_16 = arith.constant dense<0.000000e+00> : vector<8x32xf32>
    %17 = tpu.matmul %15, %16, %cst_16 {dimension_numbers = #tpu.dot_dimension_numbers<[1], [0], [0], [1], [0, 0, 1, 1], [], []>} : vector<8x16xf32>, vector<16x32xf32>, vector<8x32xf32> -> vector<8x32xf32>
    %c0_17 = arith.constant 0 : index
    %c0_18 = arith.constant 0 : index
    %18 = vector.load %arg8[%c0_17, %c0_18] : memref<1x32xf32, #tpu.memory_space<vmem>>, vector<1x32xf32>
    %19 = vector.broadcast %18 : vector<1x32xf32> to vector<8x32xf32>
    %20 = arith.addf %17, %19 : vector<8x32xf32>
    %cst_19 = arith.constant 0.000000e+00 : f32
    %21 = vector.broadcast %cst_19 : f32 to vector<8x32xf32>
    %22 = arith.maximumf %20, %21 : vector<8x32xf32>
    %c0_20 = arith.constant 0 : index
    %c0_21 = arith.constant 0 : index
    %23 = vector.load %arg16[%c0_20, %c0_21] : memref<8x64xf32, #tpu.memory_space<vmem>>, vector<8x32xf32>
    tpu.vector_store %arg16[%c0_20, %c0_21], %14 {strides = array<i32>} : memref<8x64xf32, #tpu.memory_space<vmem>>, vector<8x32xf32>,
    %c0_22 = arith.constant 0 : index
    %c32 = arith.constant 32 : index
    %24 = vector.load %arg16[%c0_22, %c32] : memref<8x64xf32, #tpu.memory_space<vmem>>, vector<8x32xf32>
    tpu.vector_store %arg16[%c0_22, %c32], %22 {strides = array<i32>} : memref<8x64xf32, #tpu.memory_space<vmem>>, vector<8x32xf32>,
    %c0_23 = arith.constant 0 : index
    %c0_24 = arith.constant 0 : index
    %25 = vector.load %arg9[%c0_23, %c0_24] : memref<64x32xf32, #tpu.memory_space<vmem>>, vector<32x32xf32>
    %cst_25 = arith.constant dense<0.000000e+00> : vector<8x32xf32>
    %26 = tpu.matmul %14, %25, %cst_25 {dimension_numbers = #tpu.dot_dimension_numbers<[1], [0], [0], [1], [0, 0, 1, 1], [], []>} : vector<8x32xf32>, vector<32x32xf32>, vector<8x32xf32> -> vector<8x32xf32>
    %c32_26 = arith.constant 32 : index
    %c0_27 = arith.constant 0 : index
    %27 = vector.load %arg9[%c32_26, %c0_27] : memref<64x32xf32, #tpu.memory_space<vmem>>, vector<32x32xf32>
    %cst_28 = arith.constant dense<0.000000e+00> : vector<8x32xf32>
    %28 = tpu.matmul %22, %27, %cst_28 {dimension_numbers = #tpu.dot_dimension_numbers<[1], [0], [0], [1], [0, 0, 1, 1], [], []>} : vector<8x32xf32>, vector<32x32xf32>, vector<8x32xf32> -> vector<8x32xf32>
    %29 = arith.addf %26, %28 : vector<8x32xf32>
    %c0_29 = arith.constant 0 : index
    %c0_30 = arith.constant 0 : index
    %30 = vector.load %arg10[%c0_29, %c0_30] : memref<1x32xf32, #tpu.memory_space<vmem>>, vector<1x32xf32>
    %31 = vector.broadcast %30 : vector<1x32xf32> to vector<8x32xf32>
    %32 = arith.addf %29, %31 : vector<8x32xf32>
    %cst_31 = arith.constant 0.000000e+00 : f32
    %33 = vector.broadcast %cst_31 : f32 to vector<8x32xf32>
    %34 = arith.maximumf %32, %33 : vector<8x32xf32>
    %c0_32 = arith.constant 0 : index
    %c0_33 = arith.constant 0 : index
    %35 = vector.load %arg11[%c0_32, %c0_33] : memref<32x32xf32, #tpu.memory_space<vmem>>, vector<32x32xf32>
    %cst_34 = arith.constant dense<0.000000e+00> : vector<8x32xf32>
    %36 = tpu.matmul %34, %35, %cst_34 {dimension_numbers = #tpu.dot_dimension_numbers<[1], [0], [0], [1], [0, 0, 1, 1], [], []>} : vector<8x32xf32>, vector<32x32xf32>, vector<8x32xf32> -> vector<8x32xf32>
    %c0_35 = arith.constant 0 : index
    %c0_36 = arith.constant 0 : index
    %37 = vector.load %arg12[%c0_35, %c0_36] : memref<1x32xf32, #tpu.memory_space<vmem>>, vector<1x32xf32>
    %38 = vector.broadcast %37 : vector<1x32xf32> to vector<8x32xf32>
    %39 = arith.addf %36, %38 : vector<8x32xf32>
    %cst_37 = arith.constant 0.000000e+00 : f32
    %40 = vector.broadcast %cst_37 : f32 to vector<8x32xf32>
    %41 = arith.maximumf %39, %40 : vector<8x32xf32>
    %c0_38 = arith.constant 0 : index
    %c0_39 = arith.constant 0 : index
    %42 = vector.load %arg13[%c0_38, %c0_39] : memref<32x4xf32, #tpu.memory_space<vmem>>, vector<32x4xf32>
    %cst_40 = arith.constant dense<0.000000e+00> : vector<8x4xf32>
    %43 = tpu.matmul %41, %42, %cst_40 {dimension_numbers = #tpu.dot_dimension_numbers<[1], [0], [0], [1], [0, 0, 1, 1], [], []>} : vector<8x32xf32>, vector<32x4xf32>, vector<8x4xf32> -> vector<8x4xf32>
    %c0_41 = arith.constant 0 : index
    %c0_42 = arith.constant 0 : index
    %44 = vector.load %arg14[%c0_41, %c0_42] : memref<1x4xf32, #tpu.memory_space<vmem>>, vector<1x4xf32>
    %45 = vector.broadcast %44 : vector<1x4xf32> to vector<8x4xf32>
    %46 = arith.addf %43, %45 : vector<8x4xf32>
    %c0_43 = arith.constant 0 : index
    %c0_44 = arith.constant 0 : index
    %47 = vector.load %arg15[%c0_43, %c0_44] : memref<8x4xf32, #tpu.memory_space<vmem>>, vector<8x4xf32>
    tpu.vector_store %arg15[%c0_43, %c0_44], %46 {strides = array<i32>} : memref<8x4xf32, #tpu.memory_space<vmem>>, vector<8x4xf32>,
    return
  }
  func.func @transform_0(%arg0: i32) -> (i32, i32) {
    %c0_i32 = arith.constant 0 : i32
    %c0_i32_0 = arith.constant 0 : i32
    return %arg0, %c0_i32 : i32, i32
  }
  func.func @transform_1(%arg0: i32) -> (i32, i32) {
    %c0_i32 = arith.constant 0 : i32
    %c0_i32_0 = arith.constant 0 : i32
    return %arg0, %c0_i32 : i32, i32
  }
  func.func @transform_2(%arg0: i32) -> (i32, i32) {
    %c0_i32 = arith.constant 0 : i32
    %c0_i32_0 = arith.constant 0 : i32
    %c0_i32_1 = arith.constant 0 : i32
    return %c0_i32, %c0_i32_0 : i32, i32
  }
  func.func @transform_3(%arg0: i32) -> (i32, i32) {
    %c0_i32 = arith.constant 0 : i32
    %c0_i32_0 = arith.constant 0 : i32
    %c0_i32_1 = arith.constant 0 : i32
    return %c0_i32, %c0_i32_0 : i32, i32
  }
  func.func @transform_4(%arg0: i32) -> (i32, i32) {
    %c0_i32 = arith.constant 0 : i32
    %c0_i32_0 = arith.constant 0 : i32
    %c0_i32_1 = arith.constant 0 : i32
    return %c0_i32, %c0_i32_0 : i32, i32
  }
  func.func @transform_5(%arg0: i32) -> (i32, i32) {
    %c0_i32 = arith.constant 0 : i32
    %c0_i32_0 = arith.constant 0 : i32
    %c0_i32_1 = arith.constant 0 : i32
    return %c0_i32, %c0_i32_0 : i32, i32
  }
  func.func @transform_6(%arg0: i32) -> (i32, i32) {
    %c0_i32 = arith.constant 0 : i32
    %c0_i32_0 = arith.constant 0 : i32
    %c0_i32_1 = arith.constant 0 : i32
    return %c0_i32, %c0_i32_0 : i32, i32
  }
  func.func @transform_7(%arg0: i32) -> (i32, i32) {
    %c0_i32 = arith.constant 0 : i32
    %c0_i32_0 = arith.constant 0 : i32
    %c0_i32_1 = arith.constant 0 : i32
    return %c0_i32, %c0_i32_0 : i32, i32
  }
  func.func @transform_8(%arg0: i32) -> (i32, i32) {
    %c0_i32 = arith.constant 0 : i32
    %c0_i32_0 = arith.constant 0 : i32
    %c0_i32_1 = arith.constant 0 : i32
    return %c0_i32, %c0_i32_0 : i32, i32
  }
  func.func @transform_9(%arg0: i32) -> (i32, i32) {
    %c0_i32 = arith.constant 0 : i32
    %c0_i32_0 = arith.constant 0 : i32
    %c0_i32_1 = arith.constant 0 : i32
    return %c0_i32, %c0_i32_0 : i32, i32
  }
  func.func @transform_10(%arg0: i32) -> (i32, i32) {
    %c0_i32 = arith.constant 0 : i32
    %c0_i32_0 = arith.constant 0 : i32
    %c0_i32_1 = arith.constant 0 : i32
    return %c0_i32, %c0_i32_0 : i32, i32
  }
  func.func @transform_11(%arg0: i32) -> (i32, i32) {
    %c0_i32 = arith.constant 0 : i32
    %c0_i32_0 = arith.constant 0 : i32
    %c0_i32_1 = arith.constant 0 : i32
    return %c0_i32, %c0_i32_0 : i32, i32
  }
  func.func @transform_12(%arg0: i32) -> (i32, i32) {
    %c0_i32 = arith.constant 0 : i32
    %c0_i32_0 = arith.constant 0 : i32
    %c0_i32_1 = arith.constant 0 : i32
    return %c0_i32, %c0_i32_0 : i32, i32
  }
  func.func @transform_13(%arg0: i32) -> (i32, i32) {
    %c0_i32 = arith.constant 0 : i32
    %c0_i32_0 = arith.constant 0 : i32
    %c0_i32_1 = arith.constant 0 : i32
    return %c0_i32, %c0_i32_0 : i32, i32
  }
  func.func @transform_14(%arg0: i32) -> (i32, i32) {
    %c0_i32 = arith.constant 0 : i32
    %c0_i32_0 = arith.constant 0 : i32
    return %arg0, %c0_i32 : i32, i32
  }
  func.func @transform_15(%arg0: i32) -> (i32, i32) {
    %c0_i32 = arith.constant 0 : i32
    %c0_i32_0 = arith.constant 0 : i32
    return %arg0, %c0_i32 : i32, i32
  }
}

</mosaic_0001>

<bundles_post_ra>
// kernel: tpu_custom_call.1
= control target key start
LH: loop header
LB: loop body
LE: loop exit
PB: predicated region body
PF: predicated region fallthrough
CT: control target
= control target key end

     0   :  { %v841_v2 = vmov 0.0|0.0   ;;  %vm842_vm0 = vmmov 0   ;;  %v843_v4 = vmov 0.0   ;;  %s1071_s0 = inlined_call_operand.vmem [shape: f32[8,16], index: 0, kind: input, shape index: {}]   ;;  %s1072_s1 = inlined_call_operand.vmem [shape: f32[8,16], index: 1, kind: input, shape index: {}]   ;;  %s1073_s2 = inlined_call_operand.vmem [shape: f32[16,32], index: 2, kind: input, shape index: {}]   ;;  %s1074_s3 = inlined_call_operand.vmem [shape: f32[1,32], index: 3, kind: input, shape index: {}]   ;;  %s1075_s4 = inlined_call_operand.vmem [shape: f32[32,32], index: 4, kind: input, shape index: {}]   ;;  %s1076_s5 = inlined_call_operand.vmem [shape: f32[1,32], index: 5, kind: input, shape index: {}]   ;;  %s1077_s6 = inlined_call_operand.vmem [shape: f32[16,32], index: 6, kind: input, shape index: {}]   ;;  %s1078_s7 = inlined_call_operand.vmem [shape: f32[1,32], index: 7, kind: input, shape index: {}]   ;;  %s1079_s8 = inlined_call_operand.vmem [shape: f32[64,32], index: 8, kind: input, shape index: {}]   ;;  %s1080_s9 = inlined_call_operand.vmem [shape: f32[1,32], index: 9, kind: input, shape index: {}]   ;;  %s1081_s10 = inlined_call_operand.vmem [shape: f32[32,32], index: 10, kind: input, shape index: {}]   ;;  %s1082_s11 = inlined_call_operand.vmem [shape: f32[1,32], index: 11, kind: input, shape index: {}]   ;;  %s1083_s12 = inlined_call_operand.vmem [shape: f32[32,4], index: 12, kind: input, shape index: {}]   ;;  %s1084_s13 = inlined_call_operand.vmem [shape: f32[1,4], index: 13, kind: input, shape index: {}]   ;;  %s1085_s14 = inlined_call_operand.vmem [shape: f32[8,4], index: 14, kind: output, shape index: {0}]   ;;  %s1086_s15 = inlined_call_operand.hbm [shape: f32[8,64], index: 15, kind: output, shape index: {1}]  }
   0x1   :  { %v51_v0 = vld [vmem:[%s1073_s2] sm:$0xff]  ;;  %v52_v1 = vld [vmem:[%s1073_s2 + $0x8] sm:$0xff]  ;;  %776 = vmatprep.subr.bf16.mxu0 %v841_v2  ;;  %711 = vmatprep.mubr.msk.f32.mxu0 %vm842_vm0, %v843_v4 }
   0x2   :  { %v777_v3 = vpack.c.bf16 %v52_v1, %v51_v0  ;;  %v135_v5 = vld [vmem:[%s1075_s4] sm:$0xff]  ;;  %v136_v6 = vld [vmem:[%s1075_s4 + $0x8] sm:$0xff]  ;;  %779 = vmatprep.subr.bf16.mxu1 %v841_v2  ;;  %722 = vmatprep.mubr.msk.f32.mxu1 %vm842_vm0, %v843_v4 }
   0x3   :  { %v780_v7 = vpack.c.bf16 %v136_v6, %v135_v5 }
   0x4   :  { %21 = vsyncpa [#allocation3], 0  ;;  %778 = vmatpush3.bf16.msra.mxu0 %v777_v3  ;;  %v50_v8 = vld [vmem:[%s1071_s0] sm:$0xff]  ;;  %vm60_vm1 = vcmask 130048   ;;  %v223_v10 = vld [vmem:[%s1077_s6 + $0x8] sm:$0xff]  ;;  %vm146_vm2 = vcmask 261120  }
   0x5   :  { %781 = vmatpush3.bf16.msra.mxu1 %v780_v7  ;;  %785 = vmatprep.subr.bf16.mxu0 %v841_v2  ;;  %v222_v9 = vld [vmem:[%s1077_s6] sm:$0xff]  ;;  %v137_v12 = vld [vmem:[%s1075_s4 + $0x10] sm:$0xff]  ;;  %v138_v13 = vld [vmem:[%s1075_s4 + $0x18] sm:$0xff]  ;;  %vm310_vm3 = vcmask 523520  }
   0x6   :  { %782 = vmatprep.subr.bf16.mxu1 %v841_v2  ;;  %v786_v11 = vpack.c.bf16 %v223_v10, %v222_v9  ;;  %v783_v14 = vpack.c.bf16 %v138_v13, %v137_v12  ;;  %v221_v15 = vld [vmem:[%s1072_s1] sm:$0xff]  ;;  %v317_v17 = vld [vmem:[%s1079_s8 + $0x28] sm:$0xff]  ;;  %v318_v28 = vld [vmem:[%s1079_s8 + $0x30] sm:$0xff] }
   0x7   :  { %712 = vmatmul.mubr.msk.f32.vlgmr.msra.gmra.mrb[0].mxu0 %vm60_vm1, %v50_v8  ;;  %v316_v16 = vld [vmem:[%s1079_s8 + $0x20] sm:$0xff]  ;;  %v313_v21 = vld [vmem:[%s1079_s8 + $0x8] sm:$0xff]  ;;  %v319_v29 = vld [vmem:[%s1079_s8 + $0x38] sm:$0xff] }
   0x8   :  { %729 = vmatprep.mubr.msk.f32.mxu0 %vm842_vm0, %v843_v4  ;;  %787 = vmatpush3.bf16.msra.mxu0 %v786_v11  ;;  %v789_v18 = vpack.c.bf16 %v317_v17, %v316_v16  ;;  %v663_v19 = vld [vmem:[%s1074_s3] ss:$0 sm:$0xff]  ;;  %v792_v31 = vpack.c.bf16 %v319_v29, %v318_v28  ;;  %v314_v32 = vld [vmem:[%s1079_s8 + $0x10] sm:$0xff]  ;;  %v315_v33 = vld [vmem:[%s1079_s8 + $0x18] sm:$0xff] }
   0x9   :  { %784 = vmatpush3.bf16.msra.mxu1 %v783_v14  ;;  %788 = vmatprep.subr.bf16.mxu0 %v841_v2  ;;  %v312_v20 = vld [vmem:[%s1079_s8] sm:$0xff]  ;;  %v798_v36 = vpack.c.bf16 %v315_v33, %v314_v32  ;;  %v475_v45 = vld [vmem:[%s1081_s10 + $0x8] sm:$0xff]  ;;  %v476_v49 = vld [vmem:[%s1081_s10 + $0x10] sm:$0xff] }
   0xa   :  { %794 = vmatprep.subr.bf16.mxu1 %v841_v2  ;;  %v795_v25 = vpack.c.bf16 %v313_v21, %v312_v20  ;;  %v667_v27 = vld [vmem:[%s1078_s7] ss:$0 sm:$0xff]  ;;  %s844_s7 = smov 32   ;;  %v477_v50 = vld [vmem:[%s1081_s10 + $0x18] sm:$0xff]  ;;  %v560_v53 = vld [vmem:[%s1083_s12 + $0x8] sm:$0xff] }
   0xb   :  { %730 = vmatmul.mubr.msk.f32.vlgmr.msra.gmra.mrb[2].mxu0 %vm60_vm1, %v221_v15  ;;  %v665_v38 = vld [vmem:[%s1076_s5] ss:$0 sm:$0xff]  ;;  %v804_v51 = vpack.c.bf16 %v477_v50, %v476_v49  ;;  %v561_v61 = vld [vmem:[%s1083_s12 + $0x10] sm:$0xff]  ;;  %v562_v62 = vld [vmem:[%s1083_s12 + $0x18] sm:$0xff] }
   0xc   :  { %740 = vmatprep.mubr.msk.f32.mxu0 %vm842_vm0, %v843_v4  ;;  %790 = vmatpush3.bf16.msra.mxu0 %v789_v18  ;;  %v474_v44 = vld [vmem:[%s1081_s10] sm:$0xff]  ;;  %v810_v63 = vpack.c.bf16 %v562_v62, %v561_v61 }
   0xd   :  { %791 = vmatprep.subr.bf16.mxu0 %v841_v2  ;;  %v801_v46 = vpack.c.bf16 %v475_v45, %v474_v44  ;;  %v559_v52 = vld [vmem:[%s1083_s12] sm:$0xff] }
   0xe   :  { %v807_v54 = vpack.c.bf16 %v560_v53, %v559_v52  ;;  %v671_v56 = vld [vmem:[%s1080_s9] ss:$0 sm:$0xff]  ;;  %s845_s9 = smov [#allocation2]  }
   0xf   :  { %v672_v0 = vld [vmem:[%s1082_s11] ss:$0 sm:$0xff]  ;;  %s653_s18 = sshll.u32 %s845_s9, 4  ;;  %s654_s18 = int_to_ptr.vmem [resolvable:$true] %s653_s18 }
  0x10   :  { %793 = vmatpush3.bf16.msra.mxu0 %v792_v31  ;;  %s817_s19 = scalar_lea.vmem %s654_s18, 128  ;;  %p822_p1 = scmp.lt.s32.totalorder %s654_s18, %s654_s18 }
  0x11   :  { %800 = vmatprep.subr.bf16.mxu0 %v841_v2  ;;  %p818_p0 = scmp.ne.s32.totalorder %s654_s18, %s817_s19  ;;  %p823_p2 = scmp.lt.s32.totalorder %s817_s19, %s817_s19 }
  0x13   :  { %p824_p3 = por %p823_p2, %p822_p1 }
  0x15   :  { %p825_p4 = pnand %p824_p3, %p818_p0 }
  0xda   :  { %v130_v22 = vpop.f32.mrb[0].mxu0 }
  0xdb   :  { %v131_v23 = vadd.f32 %v663_v19, %v130_v22  ;;  %v713_v24 = vpop.f32.mrb[1].mxu0 }
  0xdd   :  { %v134_v26 = vmax.f32 %v131_v23, 0.0 }
  0xde   :  { %v300_v30 = vpop.f32.mrb[2].mxu0 }
  0xdf   :  { %723 = vmatmul.mubr.msk.f32.vlgmr.msra.gmra.mrb[0].mxu1 %vm146_vm2, %v134_v26  ;;  %v301_v34 = vadd.f32 %v667_v27, %v300_v30  ;;  %v731_v35 = vpop.f32.mrb[3].mxu0 }
  0xe0   :  { %796 = vmatpush3.bf16.msra.mxu1 %v795_v25  ;;  %751 = vmatprep.mubr.msk.f32.mxu1 %vm842_vm0, %v843_v4 }
  0xe1   :  { %797 = vmatprep.subr.bf16.mxu1 %v841_v2  ;;  %v304_v37 = vmax.f32 %v301_v34, 0.0 }
  0xe3   :  { %741 = vmatmul.mubr.msk.f32.vlgmr.msra.gmra.mrb[4].mxu0 %vm146_vm2, %v304_v37  ;;  %307 = vrot.lane.b32.xlu0 %v304_v37, %s844_s7 }
  0xe4   :  { %799 = vmatpush3.bf16.msra.mxu1 %v798_v36  ;;  %762 = vmatprep.mubr.msk.f32.mxu0 %vm842_vm0, %v843_v4 }
  0xe5   :  { %806 = vmatprep.subr.bf16.mxu1 %v841_v2  ;;  %802 = vmatpush3.bf16.msra.mxu0 %v801_v46 }
  0xe6   :  { %803 = vmatprep.subr.bf16.mxu0 %v841_v2 }
  0xe9   :  { %805 = vmatpush3.bf16.msra.mxu0 %v804_v51 }
 0x155   :  { %v308_v43 = vpop.permute.xlu0 %307 }
 0x1b2   :  { %v216_v39 = vpop.f32.mrb[0].mxu1 }
 0x1b3   :  { %v217_v40 = vadd.f32 %v665_v38, %v216_v39  ;;  %v724_v41 = vpop.f32.mrb[1].mxu1 }
 0x1b5   :  { %v220_v42 = vmax.f32 %v217_v40, 0.0 }
 0x1b6   :  { %v388_v47 = vpop.f32.mrb[4].mxu0 }
 0x1b7   :  { %305 = vst.msk [vmem:[#allocation2] sm:$0xff] %vm146_vm2, %v220_v42  ;;  %752 = vmatmul.mubr.msk.f32.vlgmr.msra.gmra.mrb[2].mxu1 %vm146_vm2, %v220_v42  ;;  %v742_v48 = vpop.f32.mrb[5].mxu0 }
 0x1b8   :  { %773 = vmatprep.mubr.msk.f32.mxu1 %vm842_vm0, %v843_v4  ;;  %311 = vst.msk [vmem:[#allocation2] sm:$0xff] %vm310_vm3, %v308_v43  ;;  %808 = vmatpush3.bf16.msra.mxu1 %v807_v54 }
 0x1b9   :  { %809 = vmatprep.subr.bf16.mxu1 %v841_v2 }
 0x1bc   :  { %811 = vmatpush3.bf16.msra.mxu1 %v810_v63 }
 0x28a   :  { %v461_v55 = vpop.f32.mrb[2].mxu1 }
 0x28b   :  { %v462_v57 = vadd.f32 %v461_v55, %v388_v47  ;;  %v753_v58 = vpop.f32.mrb[3].mxu1 }
 0x28d   :  { %v472_v59 = vadd.f32 %v671_v56, %v462_v57 }
 0x28f   :  { %v473_v60 = vmax.f32 %v472_v59, 0.0 }
 0x291   :  { %763 = vmatmul.mubr.msk.f32.vlgmr.msra.gmra.mrb[6].mxu0 %vm146_vm2, %v473_v60 }
 0x364   :  { %v554_v1 = vpop.f32.mrb[6].mxu0 }
 0x365   :  { %v555_v2 = vadd.f32 %v672_v0, %v554_v1  ;;  %v764_v3 = vpop.f32.mrb[7].mxu0 }
 0x367   :  { %v558_v4 = vmax.f32 %v555_v2, 0.0 }
 0x369   :  { %774 = vmatmul.mubr.msk.f32.vlgmr.msra.gmra.mrb[4].mxu1 %vm146_vm2, %v558_v4 }
 0x36a   :  { %828 = shalt.err (!%p825_p4)
}
 0x36b   :  { %s829_s11 = scalar_lea.hbm %s1086_s15, 128 }
 0x36c   :  { %p830_p5 = scmp.ne.s32.totalorder %s1086_s15, %s829_s11  ;;  %p833_p6 = scmp.lt.u32.totalorder %s829_s11, %s1086_s15 }
 0x36e   :  { %p835_p7 = pnand %p833_p6, %p830_p5 }
 0x370   :  { %838 = shalt.err (!%p835_p7)
}
 0x371   :  { %656 = dma.vmem_to_hbm [thread:$0]  %s654_s18, 128, %s1086_s15, [#allocation3]   ;;  %v674_v5 = vld [vmem:[%s1084_s13] ss:$0 sm:$0xff]  ;;  %vm643_vm4 = vcmask 31744  }
 0x43c   :  { %v639_v6 = vpop.f32.mrb[4].mxu1 }
 0x43d   :  { %v640_v7 = vadd.f32 %v674_v5, %v639_v6  ;;  %v775_v8 = vpop.f32.mrb[5].mxu1 }
 0x43f   :  { %644 = vst.msk [vmem:[%s1085_s14] sm:$0xff] %vm643_vm4, %v640_v7 }
 0x440   :  { %839 = dma.done.wait [#allocation3], 128  }
 0x441   :  { %840 = vsyncadd [#allocation3], 4294967168 }
 0x442   :  { %662 = vsyncpa [#allocation3], 1 }

</bundles_post_ra>
